<compile_context>
chip_gen: v5e
topology: v5e:2x2
jax: 0.10.0
libtpu: 0.0.40
codegen_flags: <defaults>
</compile_context>

<pallas_src>
import jax
import jax.numpy as jnp
from jax import lax
from jax.experimental import pallas as pl
from jax.experimental.pallas import tpu as pltpu

# ---- model hyper-parameters (synthetic, deterministic) ----
VOCAB = 64      # token vocabulary size
HIDDEN = 32     # embedding / hidden dim
TREE_F = 4      # tree feature dim (matches trees_tensor[..., 4] in pad_list)
MAX_LEN = 8     # args.max_len

# ---- packing constants ----
PACK = 4                     # logical rows per physical row (lane-dense output)
K_OH = PACK * VOCAB          # 256: one-hot region of the fused LHS
K_TR = 128                   # PACK*TREE_F = 16 tree feats, zero-padded to a lane tile
K_TOT = K_OH + K_TR          # 384: fused matmul K
N_OUT = PACK * HIDDEN        # 128: lane-dense output width


# ---------------- Pallas kernel: fused Emb ----------------
def emb_kernel(tok_ref, trees_ref, wbig_ref, out_ref):
    # tok_ref:   (tm, PACK)     int32  token ids, pre-offset by g*VOCAB per group
    # trees_ref: (tm, K_TR)     bf16   packed tree feats (lanes 0..15 real, rest 0)
    # wbig_ref:  (K_TOT, N_OUT) bf16   block-diagonal [table ; wtree] (resident)
    # out_ref:   (tm, N_OUT)    f32
    tm = tok_ref.shape[0]
    iota = lax.broadcasted_iota(jnp.int32, (tm, K_OH), 1)
    # 4 hot lanes per physical row (one per packed logical row); groups never
    # overlap because tokens were offset by g*VOCAB in the wrapper.
    hot = iota == tok_ref[:, 0:1]
    for g in range(1, PACK):
        hot = jnp.logical_or(hot, iota == tok_ref[:, g:g + 1])
    # single fused MXU matmul: gather + tree projection, f32 accumulation
    lhs = jnp.concatenate([hot.astype(jnp.bfloat16), trees_ref[...]], axis=1)
    out_ref[...] = jnp.dot(lhs, wbig_ref[...],
                           preferred_element_type=jnp.float32)


# ---------------- wrapper ----------------
def _round_up(x, m):
    return ((x + m - 1) // m) * m


def _build_block_diag_weights(table, wtree):
    """(K_TOT, N_OUT) bf16: block-diagonal embedding table + tree projection."""
    tb = table.astype(jnp.bfloat16)
    wt = wtree.astype(jnp.bfloat16)
    w = jnp.zeros((K_TOT, N_OUT), jnp.bfloat16)
    for g in range(PACK):
        w = w.at[g * VOCAB:(g + 1) * VOCAB,
                 g * HIDDEN:(g + 1) * HIDDEN].set(tb)
        w = w.at[K_OH + g * TREE_F:K_OH + (g + 1) * TREE_F,
                 g * HIDDEN:(g + 1) * HIDDEN].set(wt)
    return w


def lm_embed(tokens_lb, trees_lb4, table, wtree, *, tm=512):
    """tokens_lb: [L, B] int32 (seq-first), trees_lb4: [L, B, 4] f32.
    Returns padded_feats [L, B, HIDDEN] f32 (what Emb() produces before
    pack_padded_sequence):  out[l, b] = table[token] + trees @ wtree."""
    L, B = tokens_lb.shape
    N = L * B

    # choose tile / padding (no divisibility asserts)
    n_phys_raw = pl.cdiv(N, PACK)
    tm_eff = min(tm, _round_up(n_phys_raw, 8))
    tm_eff = max(8, (tm_eff // 8) * 8)
    n_phys = _round_up(n_phys_raw, tm_eff)
    n_pad = n_phys * PACK

    # tokens: flatten, sanitize (OOR / negative -> sentinel that matches no lane
    # => zero embedding, same as the original one-hot behaviour), pad, pack,
    # and pre-add the per-group lane offsets g*VOCAB.
    tok = tokens_lb.reshape(N).astype(jnp.int32)
    tok = jnp.where((tok >= 0) & (tok < VOCAB), tok, K_OH)
    tok = jnp.pad(tok, (0, n_pad - N), constant_values=K_OH)
    tok_p = tok.reshape(n_phys, PACK) + \
        (jnp.arange(PACK, dtype=jnp.int32) * VOCAB)[None, :]

    # trees: bf16, pad rows, pack 4 logical rows per physical row, pad lanes
    trees = trees_lb4.reshape(N, TREE_F).astype(jnp.bfloat16)
    trees = jnp.pad(trees, ((0, n_pad - N), (0, 0)))
    trees_p = trees.reshape(n_phys, PACK * TREE_F)
    trees_p = jnp.pad(trees_p, ((0, 0), (0, K_TR - PACK * TREE_F)))

    wbig = _build_block_diag_weights(table, wtree)

    out = pl.pallas_call(
        emb_kernel,
        out_shape=jax.ShapeDtypeStruct((n_phys, N_OUT), jnp.float32),
        grid_spec=pltpu.PrefetchScalarGridSpec(
            num_scalar_prefetch=0,
            grid=(n_phys // tm_eff,),
            in_specs=[
                pl.BlockSpec((tm_eff, PACK), lambda i: (i, 0)),
                pl.BlockSpec((tm_eff, K_TR), lambda i: (i, 0)),
                # grid-invariant weights: constant index map, stays resident
                pl.BlockSpec((K_TOT, N_OUT), lambda i: (0, 0)),
            ],
            out_specs=pl.BlockSpec((tm_eff, N_OUT), lambda i: (i, 0)),
        ),
        compiler_params=pltpu.CompilerParams(
            dimension_semantics=("parallel",)),
    )(tok_p, trees_p, wbig)

    # free row-major unpack: (n_phys, 128) -> (n_pad, 32) -> slice -> (L, B, H)
    return out.reshape(n_pad, HIDDEN)[:N].reshape(L, B, HIDDEN)


# ---------------- pad_list equivalent (glue, plain JAX) ----------------
def pad_list(tokens_bl, trees_bl4, lengths):
    """tokens_bl: [B, Lmax] int32, trees_bl4: [B, Lmax, 4], lengths: [B] int32.
    Reproduces pad_list: clamp to MAX_LEN, sort descending by length,
    transpose to seq-first. Returns (tokens [L,B], trees [L,B,4], perm, lens)."""
    B, Lmax = tokens_bl.shape
    L = min(Lmax, MAX_LEN)
    tokens_bl = tokens_bl[:, :L]
    trees_bl4 = trees_bl4[:, :L, :]
    lengths = jnp.minimum(lengths, MAX_LEN)
    # zero out padding positions (pad_list builds from zero tensors)
    # TODO(synk): padded positions still get emb_table[0] downstream (token 0),
    # matching this reference; if the real Emb used padding_idx=0 they would be 0.
    pos = jnp.arange(L)[None, :]
    mask = pos < lengths[:, None]
    tokens_bl = jnp.where(mask, tokens_bl, 0)
    trees_bl4 = jnp.where(mask[:, :, None], trees_bl4, 0.0)
    # sort descending by length (stable, like torch.sort)
    perm = jnp.argsort(-lengths, stable=True)
    lengths = lengths[perm]
    tokens = jnp.transpose(tokens_bl[perm], (1, 0))          # [L, B]
    trees = jnp.transpose(trees_bl4[perm], (1, 0, 2))        # [L, B, 4]
    return tokens, trees, perm, lengths


if __name__ == "__main__":
    key = jax.random.PRNGKey(0)
    k1, k2, k3, k4 = jax.random.split(key, 4)

    B, Lmax = 2, MAX_LEN  # small shapes
    tokens = jax.random.randint(k1, (B, Lmax), 1, VOCAB, dtype=jnp.int32)
    trees = jax.random.normal(k2, (B, Lmax, TREE_F), dtype=jnp.float32)
    lengths = jnp.array([Lmax, Lmax - 2], dtype=jnp.int32)

    # deterministic parameter init (synthetic Emb weights)
    emb_table = (jax.random.normal(k3, (VOCAB, HIDDEN), dtype=jnp.float32)
                 * (1.0 / jnp.sqrt(HIDDEN)))
    w_tree = (jax.random.normal(k4, (TREE_F, HIDDEN), dtype=jnp.float32)
              * (1.0 / jnp.sqrt(TREE_F)))

    tok_lb, trees_lb4, perm_idx, lens = pad_list(tokens, trees, lengths)
    padded_feats = jax.block_until_ready(
        lm_embed(tok_lb, trees_lb4, emb_table, w_tree))

    # reference (bf16 weights/feats, f32 accumulation — same as the kernel)
    tb = emb_table.astype(jnp.bfloat16).astype(jnp.float32)
    wt = w_tree.astype(jnp.bfloat16).astype(jnp.float32)
    tr = trees_lb4.astype(jnp.bfloat16).astype(jnp.float32)
    ref = tb[tok_lb] + tr @ wt
    assert padded_feats.shape == (MAX_LEN, B, HIDDEN)
    assert jnp.allclose(padded_feats, ref, atol=2e-3, rtol=2e-3)

    # second check: larger batch exercises real 4-row packing + bigger tile
    kb1, kb2 = jax.random.split(k1)
    B2 = 64
    tokens2 = jax.random.randint(kb1, (B2, Lmax), 1, VOCAB, dtype=jnp.int32)
    trees2 = jax.random.normal(kb2, (B2, Lmax, TREE_F), dtype=jnp.float32)
    lengths2 = jnp.full((B2,), Lmax, dtype=jnp.int32)
    tok2, tr2, _, _ = pad_list(tokens2, trees2, lengths2)
    out2 = jax.block_until_ready(lm_embed(tok2, tr2, emb_table, w_tree))
    ref2 = tb[tok2] + tr2.astype(jnp.bfloat16).astype(jnp.float32) @ wt
    assert out2.shape == (MAX_LEN, B2, HIDDEN)
    assert jnp.allclose(out2, ref2, atol=2e-3, rtol=2e-3)

    # TODO(synk): LM_BaseModel.forward() is `pass` in the reference; the
    # generator / pack_padded_sequence / RNN consumption have no Pallas path.
    print("KERNEL_OK")
</pallas_src>

<mosaic_0001>
module attributes {stable_mosaic.version = 11 : i64} {
  func.func @emb_kernel(%arg0: i32, %arg1: memref<8x4xi32, #tpu.memory_space<vmem>>, %arg2: memref<8x128xbf16, #tpu.memory_space<vmem>>, %arg3: memref<384x128xbf16, #tpu.memory_space<vmem>>, %arg4: memref<8x128xf32, #tpu.memory_space<vmem>>) attributes {dimension_semantics = [#tpu.dimension_semantics<parallel>], iteration_bounds = array<i64: 1>, scalar_prefetch = 0 : i64, scratch_operands = 0 : i64, tpu.core_type = #tpu.core_type<tc>, window_params = [{transform_indices = @transform_0, window_bounds = array<i64: 8, 4>}, {transform_indices = @transform_1, window_bounds = array<i64: 8, 128>}, {pipeline_mode = #tpu.pipeline_mode<synchronous>, transform_indices = @transform_2, window_bounds = array<i64: 384, 128>}, {transform_indices = @transform_3, window_bounds = array<i64: 8, 128>}]} {
    %0 = tpu.iota {dimensions = array<i32: 1>} : vector<8x256xi32>
    %c0 = arith.constant 0 : index
    %c0_0 = arith.constant 0 : index
    %1 = vector.load %arg1[%c0, %c0_0] : memref<8x4xi32, #tpu.memory_space<vmem>>, vector<8x1xi32>
    %2 = vector.broadcast %1 : vector<8x1xi32> to vector<8x256xi32>
    %3 = arith.cmpi eq, %0, %2 : vector<8x256xi32>
    %c0_1 = arith.constant 0 : index
    %c1 = arith.constant 1 : index
    %4 = vector.load %arg1[%c0_1, %c1] : memref<8x4xi32, #tpu.memory_space<vmem>>, vector<8x1xi32>
    %5 = vector.broadcast %4 : vector<8x1xi32> to vector<8x256xi32>
    %6 = arith.cmpi eq, %0, %5 : vector<8x256xi32>
    %7 = arith.ori %3, %6 : vector<8x256xi1>
    %c0_2 = arith.constant 0 : index
    %c2 = arith.constant 2 : index
    %8 = vector.load %arg1[%c0_2, %c2] : memref<8x4xi32, #tpu.memory_space<vmem>>, vector<8x1xi32>
    %9 = vector.broadcast %8 : vector<8x1xi32> to vector<8x256xi32>
    %10 = arith.cmpi eq, %0, %9 : vector<8x256xi32>
    %11 = arith.ori %7, %10 : vector<8x256xi1>
    %c0_3 = arith.constant 0 : index
    %c3 = arith.constant 3 : index
    %12 = vector.load %arg1[%c0_3, %c3] : memref<8x4xi32, #tpu.memory_space<vmem>>, vector<8x1xi32>
    %13 = vector.broadcast %12 : vector<8x1xi32> to vector<8x256xi32>
    %14 = arith.cmpi eq, %0, %13 : vector<8x256xi32>
    %15 = arith.ori %11, %14 : vector<8x256xi1>
    %16 = arith.extui %15 : vector<8x256xi1> to vector<8x256xi32>
    %17 = arith.sitofp %16 : vector<8x256xi32> to vector<8x256xf32>
    %18 = arith.truncf %17 : vector<8x256xf32> to vector<8x256xbf16>
    %c0_4 = arith.constant 0 : index
    %c0_5 = arith.constant 0 : index
    %19 = vector.load %arg2[%c0_4, %c0_5] : memref<8x128xbf16, #tpu.memory_space<vmem>>, vector<8x128xbf16>
    %20 = tpu.concatenate %18, %19 in 1 : vector<8x256xbf16>, vector<8x128xbf16> -> vector<8x384xbf16>
    %c0_6 = arith.constant 0 : index
    %c0_7 = arith.constant 0 : index
    %21 = vector.load %arg3[%c0_6, %c0_7] : memref<384x128xbf16, #tpu.memory_space<vmem>>, vector<384x128xbf16>
    %cst = arith.constant dense<0.000000e+00> : vector<8x128xf32>
    %22 = tpu.matmul %20, %21, %cst {dimension_numbers = #tpu.dot_dimension_numbers<[1], [0], [0], [1], [0, 0, 1, 1], [], []>} : vector<8x384xbf16>, vector<384x128xbf16>, vector<8x128xf32> -> vector<8x128xf32>
    %c0_8 = arith.constant 0 : index
    %c0_9 = arith.constant 0 : index
    %23 = vector.load %arg4[%c0_8, %c0_9] : memref<8x128xf32, #tpu.memory_space<vmem>>, vector<8x128xf32>
    tpu.vector_store %arg4[%c0_8, %c0_9], %22 {strides = array<i32>} : memref<8x128xf32, #tpu.memory_space<vmem>>, vector<8x128xf32>,
    return
  }
  func.func @transform_0(%arg0: i32) -> (i32, i32) {
    %c0_i32 = arith.constant 0 : i32
    %c0_i32_0 = arith.constant 0 : i32
    return %arg0, %c0_i32 : i32, i32
  }
  func.func @transform_1(%arg0: i32) -> (i32, i32) {
    %c0_i32 = arith.constant 0 : i32
    %c0_i32_0 = arith.constant 0 : i32
    return %arg0, %c0_i32 : i32, i32
  }
  func.func @transform_2(%arg0: i32) -> (i32, i32) {
    %c0_i32 = arith.constant 0 : i32
    %c0_i32_0 = arith.constant 0 : i32
    %c0_i32_1 = arith.constant 0 : i32
    return %c0_i32, %c0_i32_0 : i32, i32
  }
  func.func @transform_3(%arg0: i32) -> (i32, i32) {
    %c0_i32 = arith.constant 0 : i32
    %c0_i32_0 = arith.constant 0 : i32
    return %arg0, %c0_i32 : i32, i32
  }
}

</mosaic_0001>

<bundles_post_ra>
// kernel: tpu_custom_call.1
= control target key start
LH: loop header
LB: loop body
LE: loop exit
PB: predicated region body
PF: predicated region fallthrough
CT: control target
= control target key end

     0   :  { %8 = vsyncpa [#allocation3], 0  ;;  %s552_s0 = inlined_call_operand.vmem [shape: s32[8,4], index: 0, kind: input, shape index: {}]   ;;  %s553_s1 = inlined_call_operand.vmem [shape: bf16[8,128], index: 1, kind: input, shape index: {}]   ;;  %s554_s2 = inlined_call_operand.hbm [shape: bf16[384,128], index: 2, kind: input, shape index: {}]   ;;  %s555_s3 = inlined_call_operand.hbm [shape: f32[8,128], index: 3, kind: output, shape index: {}]  }
   0x1   :  { %9 = vsyncpa [#allocation4], 0  ;;  %s18_s14 = sshll.u32 %s554_s2, 4  ;;  %s511_s15 = smov [#allocation2]   ;;  %s19_s14 = int_to_ptr.hbm [resolvable:$true] %s18_s14 }
   0x2   :  { %s20_s16 = sshll.u32 %s511_s15, 4  ;;  %s512_s17 = smov 64   ;;  %s21_s16 = int_to_ptr.vmem [resolvable:$true] %s20_s16 }
   0x3   :  { %s513_s18 = smov 4  }
   0x4   :  { %26 = dma.hbm_to_vmem [thread:$0]  %s19_s14, 3072, %s21_s16, [#allocation3], %s512_s17, %s512_s17, %s513_s18  }
   0x5   :  { %507 = dma.done.wait [#allocation3], 3072  }
   0x6   :  { %508 = vsyncadd [#allocation3], 4294964224  ;;  %v514_v0 = vmov 0   ;;  %v515_v1 = vmov 2   ;;  %v34_v2 = vld [vmem:[%s552_s0] sm:$0xff]  ;;  %v444_v3 = vld [vmem:[#allocation2 + $0xb8] sm:$0xff]  ;;  %v31_v30 = vlaneseq }
   0x7   :  { %454 = vset.pattern.permute.xlu0 %v514_v0  ;;  %456 = vset.pattern.permute.xlu1 %v515_v1  ;;  %v428_v4 = vld [vmem:[#allocation2 + $0x38] sm:$0xff]  ;;  %v443_v5 = vld [vmem:[#allocation2 + $0xb0] sm:$0xff]  ;;  %v442_v9 = vld [vmem:[#allocation2 + $0xa8] sm:$0xff]  ;;  %v516_v12 = vmov 1   ;;  %v517_v13 = vmov 3   ;;  %v518_v37 = vmov 0.0  }
   0x8   :  { %36 = vperm.xlu0 %454, %v34_v2   ;;  %48 = vperm.xlu1 %456, %v34_v2   ;;  %v436_v6 = vld [vmem:[#allocation2 + $0x78] sm:$0xff]  ;;  %v427_v7 = vld [vmem:[#allocation2 + $0x30] sm:$0xff]  ;;  %v426_v10 = vld [vmem:[#allocation2 + $0x28] sm:$0xff]  ;;  %v32_v33 = vand.u32 127, %v31_v30  ;;  %s313_s24 = sshll.u32 %s555_s3, 4  ;;  %s314_s24 = int_to_ptr.hbm [resolvable:$true] %s313_s24 }
   0x9   :  { %292 = vmatpush.bf16.msra.mxu2 %v444_v3  ;;  %266 = vmatpush.bf16.msra.mxu0 %v428_v4  ;;  %v435_v8 = vld [vmem:[#allocation2 + $0x70] sm:$0xff]  ;;  %v434_v11 = vld [vmem:[#allocation2 + $0x68] sm:$0xff]  ;;  %v441_v14 = vld [vmem:[#allocation2 + $0xa0] sm:$0xff] }
   0xa   :  { %279 = vmatpush.bf16.msra.mxu1 %v436_v6  ;;  %v440_v15 = vld [vmem:[#allocation2 + $0x98] sm:$0xff]  ;;  %v439_v16 = vld [vmem:[#allocation2 + $0x90] sm:$0xff]  ;;  %v438_v17 = vld [vmem:[#allocation2 + $0x88] sm:$0xff]  ;;  %v33_v34 = vadd.s32 128, %v32_v33 }
   0xb   :  { %v425_v18 = vld [vmem:[#allocation2 + $0x20] sm:$0xff]  ;;  %v424_v21 = vld [vmem:[#allocation2 + $0x18] sm:$0xff]  ;;  %v423_v24 = vld [vmem:[#allocation2 + $0x10] sm:$0xff] }
   0xc   :  { %v433_v19 = vld [vmem:[#allocation2 + $0x60] sm:$0xff]  ;;  %v432_v22 = vld [vmem:[#allocation2 + $0x58] sm:$0xff]  ;;  %v431_v25 = vld [vmem:[#allocation2 + $0x50] sm:$0xff] }
   0xd   :  { %293 = vmatpush.bf16.msra.mxu2 %v443_v5  ;;  %267 = vmatpush.bf16.msra.mxu0 %v427_v7  ;;  %v437_v20 = vld [vmem:[#allocation2 + $0x80] sm:$0xff]  ;;  %v422_v26 = vld [vmem:[#allocation2 + $0x8] sm:$0xff] }
   0xe   :  { %280 = vmatpush.bf16.msra.mxu1 %v435_v8  ;;  %v66_v23 = vld [vmem:[%s553_s1] sm:$0xf]  ;;  %v430_v27 = vld [vmem:[#allocation2 + $0x48] sm:$0xff]  ;;  %s519_s1 = smov [#allocation5]  }
   0xf   :  { %v421_v28 = vld [vmem:[#allocation2] sm:$0xff]  ;;  %s311_s21 = sshll.u32 %s519_s1, 4  ;;  %s312_s21 = int_to_ptr.vmem [resolvable:$true] %s311_s21 }
  0x10   :  { %455 = vset.pattern.permute.xlu0 %v516_v12  ;;  %457 = vset.pattern.permute.xlu1 %v517_v13  ;;  %v429_v29 = vld [vmem:[#allocation2 + $0x40] sm:$0xff] }
  0x11   :  { %41 = vperm.xlu0 %455, %v34_v2   ;;  %55 = vperm.xlu1 %457, %v34_v2  }
  0x12   :  { %294 = vmatpush.bf16.msra.mxu2 %v442_v9  ;;  %268 = vmatpush.bf16.msra.mxu0 %v426_v10 }
  0x13   :  { %281 = vmatpush.bf16.msra.mxu1 %v434_v11 }
  0x16   :  { %295 = vmatpush.bf16.msra.mxu2 %v441_v14  ;;  %269 = vmatpush.bf16.msra.mxu0 %v425_v18 }
  0x17   :  { %282 = vmatpush.bf16.msra.mxu1 %v433_v19 }
  0x19   :  { %458 = vset.pattern.permute.xlu0 %v517_v13 }
  0x1a   :  { %296 = vmatpush.bf16.msra.mxu2 %v440_v15  ;;  %270 = vmatpush.bf16.msra.mxu0 %v424_v21 }
  0x1b   :  { %283 = vmatpush.bf16.msra.mxu1 %v432_v22 }
  0x1e   :  { %297 = vmatpush.bf16.msra.mxu2 %v439_v16  ;;  %271 = vmatpush.bf16.msra.mxu0 %v423_v24 }
  0x1f   :  { %284 = vmatpush.bf16.msra.mxu1 %v431_v25 }
  0x22   :  { %298 = vmatpush.bf16.msra.mxu2 %v438_v17  ;;  %272 = vmatpush.bf16.msra.mxu0 %v422_v26 }
  0x23   :  { %285 = vmatpush.bf16.msra.mxu1 %v430_v27 }
  0x26   :  { %299 = vmatpush.bf16.msra.mxu2 %v437_v20  ;;  %273 = vmatpush.bf16.msra.mxu0 %v421_v28 }
  0x27   :  { %286 = vmatpush.bf16.msra.mxu1 %v429_v29 }
  0x29   :  { %300 = vmatmul.bf16.vlgmr.msra.gmra.mxu2 %v66_v23 }
  0x7a   :  { %v37_v31 = vpop.permute.xlu0 %36  ;;  %v49_v32 = vpop.permute.xlu1 %48 }
  0x7b   :  { %vm38_vm0 = vcmp.eq.s32.totalorder %v32_v33, %v37_v31  ;;  %vm39_vm3 = vcmp.eq.s32.totalorder %v33_v34, %v37_v31  ;;  %vm50_vm5 = vcmp.eq.s32.totalorder %v32_v33, %v49_v32  ;;  %vm51_vm8 = vcmp.eq.s32.totalorder %v33_v34, %v49_v32 }
  0x83   :  { %v42_v35 = vpop.permute.xlu0 %41  ;;  %v56_v36 = vpop.permute.xlu1 %55 }
  0x84   :  { %vm43_vm1 = vcmp.eq.s32.totalorder %v32_v33, %v42_v35  ;;  %vm44_vm2 = vcmp.eq.s32.totalorder %v33_v34, %v42_v35  ;;  %vm57_vm7 = vcmp.eq.s32.totalorder %v32_v33, %v56_v36  ;;  %vm58_vm10 = vcmp.eq.s32.totalorder %v33_v34, %v56_v36 }
  0x85   :  { %vm45_vm4 = vmor %vm38_vm0, %vm43_vm1 }
  0x86   :  { %vm46_vm6 = vmor %vm39_vm3, %vm44_vm2 }
  0x87   :  { %vm52_vm9 = vmor %vm45_vm4, %vm50_vm5 }
  0x88   :  { %vm53_vm11 = vmor %vm46_vm6, %vm51_vm8 }
  0x89   :  { %vm59_vm12 = vmor %vm52_vm9, %vm57_vm7 }
  0x8a   :  { %vm60_vm13 = vmor %vm53_vm11, %vm58_vm10  ;;  %v323_v38 = vsel %vm59_vm12, 1.0, %v518_v37 }
  0x8b   :  { %v324_v39 = vsel %vm60_vm13, 1.0, %v518_v37 }
  0x8c   :  { %v65_v40 = vpack.c.bf16 %v324_v39, %v323_v38 }
  0x8e   :  { %v68_v41 = vunpack.c.l.b16 %v65_v40  ;;  %v69_v42 = vunpack.c.h.b16 %v65_v40 }
  0x90   :  { %v70_v43 = vpack.c.b16 %v68_v41, %v68_v41  ;;  %v71_v44 = vpack.c.b16 %v69_v42, %v69_v42 }
  0x92   :  { %274 = vmatmul.bf16.vlgmr.msra.gmra.mxu0 %v70_v43  ;;  %287 = vmatmul.bf16.vlgmr.msra.gmra.mxu1 %v71_v44 }
  0xac   :  { %v301_v45 = vpop.f32.mrf.mxu2 }
  0xb4   :  { %v303_v46 = vpop.f32.mrf.mxu2 }
 0x10f   :  { %v275_v47 = vpop.f32.mrf.mxu0  ;;  %v288_v48 = vpop.f32.mrf.mxu1 }
 0x110   :  { %v289_v49 = vadd.f32 %v288_v48, %v275_v47 }
 0x112   :  { %v302_v50 = vadd.f32 %v301_v45, %v289_v49 }
 0x114   :  { %305 = vst [vmem:[#allocation5] sm:$0xff] %v302_v50 }
 0x115   :  { %316 = dma.vmem_to_hbm [thread:$0]  %s312_s21, 128, %s314_s24, [#allocation4]  }
 0x117   :  { %v277_v51 = vpop.f32.mrf.mxu0  ;;  %v290_v52 = vpop.f32.mrf.mxu1 }
 0x118   :  { %509 = dma.done.wait [#allocation4], 128  }
 0x119   :  { %510 = vsyncadd [#allocation4], 4294967168 }
 0x11a   :  { %321 = vsyncpa [#allocation3], 1 }
 0x11b   :  { %322 = vsyncpa [#allocation4], 1 }

</bundles_post_ra>
